<compile_context>
chip_gen: v7x
topology: tpu7x:2x2x1
jax: 0.10.0
libtpu: 0.0.40
codegen_flags: <defaults>
</compile_context>

<pallas_src>
import functools

import jax
import jax.numpy as jnp
import numpy as np
from jax.experimental import pallas as pl
from jax.experimental.pallas import tpu as pltpu

_PIX_RADIUS = 5.0
# Squared-distance threshold with a small slack (~1e-3 px at the 5 px boundary) that
# absorbs f32 rounding of the MXU-computed Gram expansion |a|^2 - 2ab + |b|^2.
_THRESH_SQ = _PIX_RADIUS * _PIX_RADIUS + 1e-2

# Double-buffered P row-tile budget (bytes): conservative so the working set fits the
# default scoped-VMEM limit on every generation (v5e 16 MiB ... v7x 32-of-64 MiB).
_P_TILE_BUDGET = 8 * 1024 * 1024


def _round_up(x, m):
    return ((x + m - 1) // m) * m


def _choose_tm(n2, n3, p_itemsize, block_m):
    """Largest row tile (multiple of 8, <=512) whose double-buffered P tile fits budget."""
    if block_m is not None:
        tm = block_m
    else:
        tm = 512
        while tm > 8 and 2 * tm * _round_up(n3, 128) * p_itemsize > _P_TILE_BUDGET:
            tm //= 2
    tm = max(8, min(tm, _round_up(n2, 8)))
    return _round_up(tm, 8)


def _vmem_limit_bytes(tm, n3, p_itemsize):
    """Explicit scoped-VMEM request sized from the actual buffers with ~25% headroom."""
    lanes = _round_up(n3, 128)
    p_tile = tm * lanes * p_itemsize           # streamed P tile
    a_tile = tm * 128 * 4                      # (tm, D+2) pads lanes to 128
    b_full = 8 * lanes * 4                     # (D+2, N3) pads sublanes to 8
    outs = 8 * (128 + lanes) * 4               # small per-tile output blocks
    temps = 6 * tm * lanes * 4                 # d2 / mask / pm / upcast-P live values
    need = 2 * (p_tile + a_tile + b_full + outs) + temps
    need = int(need * 1.25) + (2 << 20)
    return max(16 << 20, min(need, 64 << 20))


def _keypoints_loss_kernel(a_ref, b_ref, p_ref, scal_ref, col_ref):
    """One independent N2 row-tile of the KeypointsLoss forward pass.

    Inputs (VMEM tiles):
      a_ref    : (TM, D+2) f32  augmented 2D keypoints  [-2*a, 1, |a|^2]
      b_ref    : (D+2, N3) f32  augmented 3D keypoints  [b ; |b|^2 ; 1]  (same block each step)
      p_ref    : (TM, N3)       P row tile, streamed at its native dtype

    Per-tile partial outputs (no cross-step state -> grid axis is "parallel"):
      scal_ref : (1, 1, 128) f32  lane0 = sum(P[C_gt]), lane1 = sum(P),
                                  lane2 = #rows with >=1 inlier
      col_ref  : (1, 1, N3)  f32  column-wise inlier indicator for this tile
    """
    a = a_ref[...]
    b = b_ref[...]
    p = p_ref[...].astype(jnp.float32)

    # Whole (TM, N3) squared-distance tile in a single MXU matmul (augmented Gram):
    #   d2[i, j] = |a_i|^2 - 2 a_i . b_j + |b_j|^2
    d2 = jnp.dot(a, b, preferred_element_type=jnp.float32)            # (TM, N3)
    mask_f = (d2 <= _THRESH_SQ).astype(jnp.float32)                   # C_gt tile

    pm = p * mask_f
    rowcnt = jnp.sum(mask_f, axis=1, keepdims=True)                   # (TM, 1)

    msum = jnp.sum(pm)                                                 # sum(P[C_gt]) in tile
    psum = jnp.sum(p)                                                  # sum(P) in tile
    inl2d = jnp.sum((rowcnt > 0.0).astype(jnp.float32))                # 2d inliers in tile
    colmask = (jnp.sum(mask_f, axis=0, keepdims=True) > 0.0)           # (1, N3)

    # Compose the three scalars into one lane-dense vector -> single unmasked store.
    lane = jax.lax.broadcasted_iota(jnp.int32, scal_ref.shape, 2)
    scal_ref[...] = jnp.where(lane == 0, msum,
                    jnp.where(lane == 1, psum,
                    jnp.where(lane == 2, inl2d, 0.0))).astype(jnp.float32)
    col_ref[...] = colmask.astype(jnp.float32).reshape(col_ref.shape)


@functools.partial(jax.jit, static_argnames=("block_m",))
def keypoints_loss(kpts_2d_pix, kpts_3d_pix, P, *, block_m=None):
    """JAX wrapper reproducing KeypointsLoss.forward.

    kpts_2d_pix : (N2, D) 2D keypoint pixel coordinates
    kpts_3d_pix : (N3, D) projected 3D keypoint pixel coordinates
    P           : (1, N2, N3) or (N2, N3) predicted correspondence matrix
                  (streamed at its native dtype, e.g. bf16, and upcast per tile)
    Returns dict with 'loss', 'loss_correspondence' plus the analysis scalars.
    """
    if P.ndim == 3:
        P = P[0]                                   # C_pd = output_dict['P'][0]
    p = P                                          # keep native dtype for the HBM stream
    k2 = kpts_2d_pix.astype(jnp.float32)
    k3 = kpts_3d_pix.astype(jnp.float32)

    n2, d = k2.shape
    n3 = k3.shape[0]

    # Distance-preserving centering keeps the Gram-expansion terms small -> tight f32
    # accuracy for the MXU-computed squared distances.
    c = jnp.mean(k3, axis=0, keepdims=True)
    k2c = k2 - c
    k3c = k3 - c

    # Tiny augmented operands (few KB) so d2 is one matmul inside the kernel.
    a_aug = jnp.concatenate(
        [-2.0 * k2c,
         jnp.ones((n2, 1), jnp.float32),
         jnp.sum(k2c * k2c, axis=1, keepdims=True)], axis=1)          # (N2, D+2)
    b_aug = jnp.concatenate(
        [k3c.T,
         jnp.sum(k3c * k3c, axis=1, keepdims=True).T,
         jnp.ones((1, n3), jnp.float32)], axis=0)                     # (D+2, N3)

    p_item = jnp.dtype(p.dtype).itemsize
    tm = _choose_tm(n2, n3, p_item, block_m)

    n2p = _round_up(n2, tm)
    if n2p != n2:
        pad = n2p - n2
        # Padded 2D-keypoint rows: [0,...,0, 1, BIG] -> d2 = |b|^2 + BIG, never inliers;
        # padded P rows are zero.
        pad_rows = (jnp.zeros((pad, d + 2), jnp.float32)
                    .at[:, d].set(1.0).at[:, d + 1].set(1e9))
        a_aug = jnp.concatenate([a_aug, pad_rows], axis=0)
        p = jnp.pad(p, ((0, pad), (0, 0)))
    n_tiles = n2p // tm

    scal, colm = pl.pallas_call(
        _keypoints_loss_kernel,
        grid=(n_tiles,),
        in_specs=[
            pl.BlockSpec((tm, d + 2), lambda i: (i, 0)),   # augmented 2D keypoints tile
            pl.BlockSpec((d + 2, n3), lambda i: (0, 0)),   # all augmented 3D keypoints
            pl.BlockSpec((tm, n3), lambda i: (i, 0)),      # P row tile (the big HBM stream)
        ],
        out_specs=(
            pl.BlockSpec((1, 1, 128), lambda i: (i, 0, 0)),
            pl.BlockSpec((1, 1, n3), lambda i: (i, 0, 0)),
        ),
        out_shape=(
            jax.ShapeDtypeStruct((n_tiles, 1, 128), jnp.float32),
            jax.ShapeDtypeStruct((n_tiles, 1, n3), jnp.float32),
        ),
        compiler_params=pltpu.CompilerParams(
            # Each tile writes its own output blocks -> embarrassingly parallel over N2
            # (uses both TensorCores on v7x; neutral on single-TC v5e/v6e).
            dimension_semantics=("parallel",),
            vmem_limit_bytes=_vmem_limit_bytes(tm, n3, p_item),
        ),
    )(a_aug, b_aug, p)

    # Tiny final reduction over per-tile partials (n_tiles x (128 + N3) elements).
    msum = jnp.sum(scal[:, 0, 0])
    psum = jnp.sum(scal[:, 0, 1])
    inl2d = jnp.sum(scal[:, 0, 2]).astype(jnp.int32)
    inl3d = jnp.sum(jnp.max(colm[:, 0, :], axis=0) > 0.0).astype(jnp.int32)
    loss = -jnp.log(msum)   # +inf if no pair is within 5 px (same as the reference module)

    return {
        "loss": loss,
        "loss_correspondence": loss,
        "masked_prob_sum": msum,
        "total_prob_sum": psum,
        "inliers_2d": inl2d,
        "inliers_3d": inl3d,
    }


def _reference(kpts_2d, kpts_3d, P):
    """Pure-numpy reference of the PyTorch forward for validation."""
    a = np.asarray(kpts_2d, np.float64)
    b = np.asarray(kpts_3d, np.float64)
    p = np.asarray(P, np.float64)
    if p.ndim == 3:
        p = p[0]
    dist = np.sqrt(((a[:, None, :] - b[None, :, :]) ** 2).sum(-1))
    c_gt = dist <= 5.0
    msum = p[c_gt].sum()
    loss = -np.log(msum)
    inl2d = (c_gt.sum(1) > 0).sum()
    inl3d = (c_gt.sum(0) > 0).sum()
    return loss, msum, p.sum(), inl2d, inl3d


if __name__ == "__main__":
    # Small, module-consistent shapes: N2 2D keypoints, N3 3D keypoints (pixel coords,
    # D=2), correspondence probability matrix P of shape (1, N2, N3).
    N2, N3, D = 128, 256, 2

    key = jax.random.PRNGKey(0)
    k_a, k_b, k_p = jax.random.split(key, 3)

    # Keypoints on a half-pixel grid inside a 64x64 window: plenty of <=5 px pairs, and
    # no pair sits within f32 noise of the 5 px decision boundary (d^2 is a multiple of
    # 0.25, far larger than the kernel's ~1e-3 rounding + 1e-2 slack).
    kpts_2d_pix = jnp.round(
        jax.random.uniform(k_a, (N2, D), jnp.float32, 0.0, 64.0) * 2.0) / 2.0
    kpts_3d_pix = jnp.round(
        jax.random.uniform(k_b, (N3, D), jnp.float32, 0.0, 64.0) * 2.0) / 2.0

    # Predicted soft-assignment matrix (positive, rows normalized).
    logits = jax.random.uniform(k_p, (1, N2, N3), jnp.float32, 0.0, 1.0)
    P = logits / jnp.sum(logits, axis=-1, keepdims=True)

    out = keypoints_loss(kpts_2d_pix, kpts_3d_pix, P)
    out = jax.tree_util.tree_map(jax.block_until_ready, out)

    ref_loss, ref_msum, ref_psum, ref_i2d, ref_i3d = _reference(
        kpts_2d_pix, kpts_3d_pix, P)

    np.testing.assert_allclose(float(out["loss"]), ref_loss, rtol=1e-4)
    np.testing.assert_allclose(float(out["masked_prob_sum"]), ref_msum, rtol=1e-4)
    np.testing.assert_allclose(float(out["total_prob_sum"]), ref_psum, rtol=1e-4)
    assert int(out["inliers_2d"]) == int(ref_i2d)
    assert int(out["inliers_3d"]) == int(ref_i3d)

    print("KERNEL_OK")
</pallas_src>

<mosaic_0001>
module attributes {stable_mosaic.version = 11 : i64} {
  func.func @_keypoints_loss_kernel(%arg0: i32, %arg1: memref<128x4xf32, #tpu.memory_space<vmem>>, %arg2: memref<4x256xf32, #tpu.memory_space<vmem>>, %arg3: memref<128x256xf32, #tpu.memory_space<vmem>>, %arg4: memref<1x1x128xf32, #tpu.memory_space<vmem>>, %arg5: memref<1x1x256xf32, #tpu.memory_space<vmem>>) attributes {dimension_semantics = [#tpu.dimension_semantics<parallel>], iteration_bounds = array<i64: 1>, scalar_prefetch = 0 : i64, scratch_operands = 0 : i64, tpu.core_type = #tpu.core_type<tc>, window_params = [{transform_indices = @transform_0, window_bounds = array<i64: 128, 4>}, {pipeline_mode = #tpu.pipeline_mode<synchronous>, transform_indices = @transform_1, window_bounds = array<i64: 4, 256>}, {transform_indices = @transform_2, window_bounds = array<i64: 128, 256>}, {transform_indices = @transform_3, window_bounds = array<i64: 1, 1, 128>}, {transform_indices = @transform_4, window_bounds = array<i64: 1, 1, 256>}]} {
    %c0 = arith.constant 0 : index
    %c0_0 = arith.constant 0 : index
    %0 = vector.load %arg1[%c0, %c0_0] : memref<128x4xf32, #tpu.memory_space<vmem>>, vector<128x4xf32>
    %c0_1 = arith.constant 0 : index
    %c0_2 = arith.constant 0 : index
    %1 = vector.load %arg2[%c0_1, %c0_2] : memref<4x256xf32, #tpu.memory_space<vmem>>, vector<4x256xf32>
    %c0_3 = arith.constant 0 : index
    %c0_4 = arith.constant 0 : index
    %2 = vector.load %arg3[%c0_3, %c0_4] : memref<128x256xf32, #tpu.memory_space<vmem>>, vector<128x256xf32>
    %cst = arith.constant dense<0.000000e+00> : vector<128x256xf32>
    %3 = tpu.matmul %0, %1, %cst {dimension_numbers = #tpu.dot_dimension_numbers<[1], [0], [0], [1], [0, 0, 1, 1], [], []>} : vector<128x4xf32>, vector<4x256xf32>, vector<128x256xf32> -> vector<128x256xf32>
    %cst_5 = arith.constant 2.501000e+01 : f32
    %4 = vector.broadcast %cst_5 : f32 to vector<128x256xf32>
    %5 = arith.cmpf ole, %3, %4 : vector<128x256xf32>
    %6 = arith.extui %5 : vector<128x256xi1> to vector<128x256xi32>
    %7 = arith.sitofp %6 : vector<128x256xi32> to vector<128x256xf32>
    %8 = arith.mulf %2, %7 : vector<128x256xf32>
    %cst_6 = arith.constant dense<0.000000e+00> : vector<128xf32>
    %9 = vector.multi_reduction <add>, %7, %cst_6 [1] : vector<128x256xf32> to vector<128xf32>
    %10 = vector.shape_cast %9 : vector<128xf32> to vector<128x1xf32>
    %11 = vector.shape_cast %8 : vector<128x256xf32> to vector<1x128x256xf32>
    %cst_7 = arith.constant dense<0.000000e+00> : vector<1xf32>
    %12 = vector.multi_reduction <add>, %11, %cst_7 [1, 2] : vector<1x128x256xf32> to vector<1xf32>
    %13 = vector.shape_cast %12 : vector<1xf32> to vector<1x1x1xf32>
    %14 = vector.extract %13[0, 0, 0] : f32 from vector<1x1x1xf32>
    %15 = vector.shape_cast %2 : vector<128x256xf32> to vector<1x128x256xf32>
    %cst_8 = arith.constant dense<0.000000e+00> : vector<1xf32>
    %16 = vector.multi_reduction <add>, %15, %cst_8 [1, 2] : vector<1x128x256xf32> to vector<1xf32>
    %17 = vector.shape_cast %16 : vector<1xf32> to vector<1x1x1xf32>
    %18 = vector.extract %17[0, 0, 0] : f32 from vector<1x1x1xf32>
    %cst_9 = arith.constant 0.000000e+00 : f32
    %19 = vector.broadcast %cst_9 : f32 to vector<128x1xf32>
    %20 = arith.cmpf ogt, %10, %19 : vector<128x1xf32>
    %21 = arith.extui %20 : vector<128x1xi1> to vector<128x1xi32>
    %22 = arith.sitofp %21 : vector<128x1xi32> to vector<128x1xf32>
    %23 = vector.shape_cast %22 : vector<128x1xf32> to vector<1x128x1xf32>
    %cst_10 = arith.constant dense<0.000000e+00> : vector<1xf32>
    %24 = vector.multi_reduction <add>, %23, %cst_10 [1, 2] : vector<1x128x1xf32> to vector<1xf32>
    %25 = vector.shape_cast %24 : vector<1xf32> to vector<1x1x1xf32>
    %26 = vector.extract %25[0, 0, 0] : f32 from vector<1x1x1xf32>
    %cst_11 = arith.constant dense<0.000000e+00> : vector<256xf32>
    %27 = vector.multi_reduction <add>, %7, %cst_11 [0] : vector<128x256xf32> to vector<256xf32>
    %28 = vector.shape_cast %27 : vector<256xf32> to vector<1x256xf32>
    %cst_12 = arith.constant 0.000000e+00 : f32
    %29 = vector.broadcast %cst_12 : f32 to vector<1x256xf32>
    %30 = arith.cmpf ogt, %28, %29 : vector<1x256xf32>
    %31 = tpu.iota {dimensions = array<i32: 2>} : vector<1x1x128xi32>
    %c0_i32 = arith.constant 0 : i32
    %32 = vector.broadcast %c0_i32 : i32 to vector<1x1x128xi32>
    %33 = arith.cmpi eq, %31, %32 : vector<1x1x128xi32>
    %c1_i32 = arith.constant 1 : i32
    %34 = vector.broadcast %c1_i32 : i32 to vector<1x1x128xi32>
    %35 = arith.cmpi eq, %31, %34 : vector<1x1x128xi32>
    %c2_i32 = arith.constant 2 : i32
    %36 = vector.broadcast %c2_i32 : i32 to vector<1x1x128xi32>
    %37 = arith.cmpi eq, %31, %36 : vector<1x1x128xi32>
    %cst_13 = arith.constant 0.000000e+00 : f32
    %38 = vector.broadcast %26 : f32 to vector<1x1x128xf32>
    %39 = vector.broadcast %cst_13 : f32 to vector<1x1x128xf32>
    %40 = arith.select %37, %38, %39 : vector<1x1x128xi1>, vector<1x1x128xf32>
    %41 = vector.broadcast %18 : f32 to vector<1x1x128xf32>
    %42 = arith.select %35, %41, %40 : vector<1x1x128xi1>, vector<1x1x128xf32>
    %43 = vector.broadcast %14 : f32 to vector<1x1x128xf32>
    %44 = arith.select %33, %43, %42 : vector<1x1x128xi1>, vector<1x1x128xf32>
    %c0_14 = arith.constant 0 : index
    %c0_15 = arith.constant 0 : index
    %c0_16 = arith.constant 0 : index
    %45 = vector.load %arg4[%c0_14, %c0_15, %c0_16] : memref<1x1x128xf32, #tpu.memory_space<vmem>>, vector<1x1x128xf32>
    tpu.vector_store %arg4[%c0_14, %c0_15, %c0_16], %44 {strides = array<i32>} : memref<1x1x128xf32, #tpu.memory_space<vmem>>, vector<1x1x128xf32>,
    %46 = arith.extui %30 : vector<1x256xi1> to vector<1x256xi32>
    %47 = arith.sitofp %46 : vector<1x256xi32> to vector<1x256xf32>
    %48 = vector.shape_cast %47 : vector<1x256xf32> to vector<1x1x256xf32>
    %c0_17 = arith.constant 0 : index
    %c0_18 = arith.constant 0 : index
    %c0_19 = arith.constant 0 : index
    %49 = vector.load %arg5[%c0_17, %c0_18, %c0_19] : memref<1x1x256xf32, #tpu.memory_space<vmem>>, vector<1x1x256xf32>
    tpu.vector_store %arg5[%c0_17, %c0_18, %c0_19], %48 {strides = array<i32>} : memref<1x1x256xf32, #tpu.memory_space<vmem>>, vector<1x1x256xf32>,
    return
  }
  func.func @transform_0(%arg0: i32) -> (i32, i32) {
    %c0_i32 = arith.constant 0 : i32
    %c0_i32_0 = arith.constant 0 : i32
    return %arg0, %c0_i32 : i32, i32
  }
  func.func @transform_1(%arg0: i32) -> (i32, i32) {
    %c0_i32 = arith.constant 0 : i32
    %c0_i32_0 = arith.constant 0 : i32
    %c0_i32_1 = arith.constant 0 : i32
    return %c0_i32, %c0_i32_0 : i32, i32
  }
  func.func @transform_2(%arg0: i32) -> (i32, i32) {
    %c0_i32 = arith.constant 0 : i32
    %c0_i32_0 = arith.constant 0 : i32
    return %arg0, %c0_i32 : i32, i32
  }
  func.func @transform_3(%arg0: i32) -> (i32, i32, i32) {
    %c0_i32 = arith.constant 0 : i32
    %c0_i32_0 = arith.constant 0 : i32
    %c0_i32_1 = arith.constant 0 : i32
    return %arg0, %c0_i32, %c0_i32_0 : i32, i32, i32
  }
  func.func @transform_4(%arg0: i32) -> (i32, i32, i32) {
    %c0_i32 = arith.constant 0 : i32
    %c0_i32_0 = arith.constant 0 : i32
    %c0_i32_1 = arith.constant 0 : i32
    return %arg0, %c0_i32, %c0_i32_0 : i32, i32, i32
  }
}

</mosaic_0001>

<bundles_post_ra>
// kernel: keypoints_loss.1
= control target key start
LH: loop header
LB: loop body
LE: loop exit
PB: predicated region body
PF: predicated region fallthrough
CT: control target
= control target key end

     0   :  { %10 = vsyncpa [#allocation3], 0  ;;  %s839_s15 = smov [#allocation2]   ;;  %s1241_s0 = inlined_call_operand.vmem [shape: f32[128,4], index: 0, kind: input, shape index: {}]   ;;  %s1242_s1 = inlined_call_operand.vmem [shape: f32[4,256], index: 1, kind: input, shape index: {}]   ;;  %s1243_s2 = inlined_call_operand.hbm [shape: f32[128,256], index: 2, kind: input, shape index: {}]   ;;  %s1244_s3 = inlined_call_operand.vmem [shape: f32[1,1,128], index: 3, kind: output, shape index: {0}]   ;;  %s1245_s4 = inlined_call_operand.vmem [shape: f32[1,1,256], index: 4, kind: output, shape index: {1}]  }
   0x1   :  { %s20_s16 = sshll.u32 %s839_s15, 4  ;;  %s815_s19 = scalar_lea.hbm %s1243_s2, 4096  ;;  %s21_s16 = int_to_ptr.vmem [resolvable:$true] %s20_s16 }
   0x2   :  { %p816_p0 = scmp.ne.s32.totalorder %s1243_s2, %s815_s19  ;;  %p819_p1 = scmp.lt.u32.totalorder %s815_s19, %s1243_s2 }
   0x4   :  { %p821_p2 = pnand %p819_p1, %p816_p0 }
   0x6   :  { %824 = shalt.err (!%p821_p2)
}
   0x7   :  { %s825_s24 = scalar_lea.vmem %s21_s16, 4096  ;;  %p830_p4 = scmp.lt.s32.totalorder %s21_s16, %s21_s16 }
   0x8   :  { %p826_p3 = scmp.ne.s32.totalorder %s21_s16, %s825_s24  ;;  %p831_p5 = scmp.lt.s32.totalorder %s825_s24, %s825_s24 }
   0xa   :  { %p832_p6 = por %p831_p5, %p830_p4 }
   0xc   :  { %p833_p7 = pnand %p832_p6, %p826_p3 }
   0xe   :  { %836 = shalt.err (!%p833_p7)
}
   0xf   :  { %s840_s25 = smov 256   ;;  %s841_s26 = smov 16  }
  0x10   :  { %26 = dma.hbm_to_vmem [thread:$0]  %s1243_s2, 4096, %s21_s16, [#allocation3], %s840_s25, %s840_s25, %s841_s26  }
  0x11   :  { %837 = dma.done.wait [#allocation3], 4096  }
  0x12   :  { %838 = vsyncadd [#allocation3], 4294963200  ;;  %v842_v0 = vmov 0.0   ;;  %v46_v1 = vld [vmem:[%s1242_s1] sm:$0xff]  ;;  %vm130_vm0 = vcmask 1043456   ;;  %vm81_vm1 = vcmask 31744  }
  0x13   :  { %199 = vmatprep.mubr.f32.mxu0 %v842_v0  ;;  %247 = vmatprep.mubr.f32.mxu1 %v842_v0  ;;  %v80_v2 = vcombine.high %v46_v1, %v46_v1  ;;  %v30_v3 = vld [vmem:[%s1241_s0] sm:$0xff]  ;;  %v31_v5 = vld [vmem:[%s1241_s0 + $0x8] sm:$0xff]  ;;  %v32_v7 = vld [vmem:[%s1241_s0 + $0x10] sm:$0xff] }
  0x14   :  { %v38_v4 = vld [vmem:[%s1241_s0 + $0x40] sm:$0xff]  ;;  %v39_v6 = vld [vmem:[%s1241_s0 + $0x48] sm:$0xff]  ;;  %v40_v8 = vld [vmem:[%s1241_s0 + $0x50] sm:$0xff] }
  0x15   :  { %733 = vmatprep.subr.msk.mxu0 %vm130_vm0, %v80_v2  ;;  %801 = vmatprep.subr.msk.mxu1 %vm130_vm0, %v80_v2  ;;  %v33_v9 = vld [vmem:[%s1241_s0 + $0x18] sm:$0xff]  ;;  %v34_v11 = vld [vmem:[%s1241_s0 + $0x20] sm:$0xff]  ;;  %v35_v13 = vld [vmem:[%s1241_s0 + $0x28] sm:$0xff] }
  0x16   :  { %734 = vmatpush1.msk.msra.mxu0 %vm130_vm0, %v46_v1  ;;  %802 = vmatpush1.msk.msra.mxu1 %vm130_vm0, %v46_v1  ;;  %v41_v10 = vld [vmem:[%s1241_s0 + $0x58] sm:$0xff]  ;;  %v42_v12 = vld [vmem:[%s1241_s0 + $0x60] sm:$0xff]  ;;  %v43_v14 = vld [vmem:[%s1241_s0 + $0x68] sm:$0xff] }
  0x17   :  { %735 = vmatmul.mubr.msk.f32.vlgmr.msra.gmra.mrb[0].mxu0 %vm81_vm1, %v30_v3  ;;  %743 = vmatmul.mubr.msk.f32.vlgmr.msra.gmra.mrb[0].mxu1 %vm81_vm1, %v38_v4  ;;  %v36_v15 = vld [vmem:[%s1241_s0 + $0x30] sm:$0xff]  ;;  %v37_v17 = vld [vmem:[%s1241_s0 + $0x38] sm:$0xff]  ;;  %v47_v19 = vld [vmem:[#allocation2] sm:$0xff] }
  0x18   :  { %205 = vmatprep.mubr.f32.mxu0 %v842_v0  ;;  %253 = vmatprep.mubr.f32.mxu1 %v842_v0  ;;  %v44_v16 = vld [vmem:[%s1241_s0 + $0x70] sm:$0xff]  ;;  %v45_v18 = vld [vmem:[%s1241_s0 + $0x78] sm:$0xff]  ;;  %v48_v20 = vld [vmem:[#allocation2 + $0x8] sm:$0xff] }
  0x19   :  { %v512_v21 = vadd.f32 %v48_v20, %v47_v19  ;;  %v964_v22 = vld [vmem:[#allocation2 + $0x10] sm:$0xff]  ;;  %v967_v24 = vld [vmem:[#allocation2 + $0x18] sm:$0xff]  ;;  %v970_v26 = vld [vmem:[#allocation2 + $0x20] sm:$0xff] }
  0x1a   :  { %v973_v28 = vld [vmem:[#allocation2 + $0x28] sm:$0xff]  ;;  %v976_v30 = vld [vmem:[#allocation2 + $0x30] sm:$0xff]  ;;  %v979_v32 = vld [vmem:[#allocation2 + $0x38] sm:$0xff] }
  0x1b   :  { %736 = vmatmul.mubr.msk.f32.gmra.mrb[2].mxu0 %vm81_vm1, %v31_v5  ;;  %744 = vmatmul.mubr.msk.f32.gmra.mrb[2].mxu1 %vm81_vm1, %v39_v6  ;;  %v513_v23 = vadd.f32 %v512_v21, %v964_v22  ;;  %v982_v34 = vld [vmem:[#allocation2 + $0x40] sm:$0xff]  ;;  %v985_v36 = vld [vmem:[#allocation2 + $0x48] sm:$0xff]  ;;  %v988_v38 = vld [vmem:[#allocation2 + $0x50] sm:$0xff] }
  0x1c   :  { %211 = vmatprep.mubr.f32.mxu0 %v842_v0  ;;  %259 = vmatprep.mubr.f32.mxu1 %v842_v0  ;;  %v991_v40 = vld [vmem:[#allocation2 + $0x58] sm:$0xff]  ;;  %v994_v42 = vld [vmem:[#allocation2 + $0x60] sm:$0xff]  ;;  %v997_v44 = vld [vmem:[#allocation2 + $0x68] sm:$0xff] }
  0x1d   :  { %v514_v25 = vadd.f32 %v513_v23, %v967_v24  ;;  %v1000_v46 = vld [vmem:[#allocation2 + $0x70] sm:$0xff]  ;;  %v1003_v48 = vld [vmem:[#allocation2 + $0x78] sm:$0xff]  ;;  %v1006_v50 = vld [vmem:[#allocation2 + $0x80] sm:$0xff] }
  0x1e   :  { %v1009_v52 = vld [vmem:[#allocation2 + $0x88] sm:$0xff]  ;;  %v1012_v54 = vld [vmem:[#allocation2 + $0x90] sm:$0xff]  ;;  %v1015_v58 = vld [vmem:[#allocation2 + $0x98] sm:$0xff] }
  0x1f   :  { %737 = vmatmul.mubr.msk.f32.gmra.mrb[4].mxu0 %vm81_vm1, %v32_v7  ;;  %745 = vmatmul.mubr.msk.f32.gmra.mrb[4].mxu1 %vm81_vm1, %v40_v8  ;;  %v515_v27 = vadd.f32 %v514_v25, %v970_v26 }
  0x20   :  { %217 = vmatprep.mubr.f32.mxu0 %v842_v0  ;;  %265 = vmatprep.mubr.f32.mxu1 %v842_v0 }
  0x21   :  { %v516_v29 = vadd.f32 %v515_v27, %v973_v28 }
  0x23   :  { %738 = vmatmul.mubr.msk.f32.gmra.mrb[6].mxu0 %vm81_vm1, %v33_v9  ;;  %746 = vmatmul.mubr.msk.f32.gmra.mrb[6].mxu1 %vm81_vm1, %v41_v10  ;;  %v517_v31 = vadd.f32 %v516_v29, %v976_v30 }
  0x24   :  { %223 = vmatprep.mubr.f32.mxu0 %v842_v0  ;;  %271 = vmatprep.mubr.f32.mxu1 %v842_v0 }
  0x25   :  { %v518_v33 = vadd.f32 %v517_v31, %v979_v32 }
  0x27   :  { %739 = vmatmul.mubr.msk.f32.gmra.mrb[8].mxu0 %vm81_vm1, %v34_v11  ;;  %747 = vmatmul.mubr.msk.f32.gmra.mrb[8].mxu1 %vm81_vm1, %v42_v12  ;;  %v519_v35 = vadd.f32 %v518_v33, %v982_v34  ;;  %v1030_v11 = vld [vmem:[#allocation2 + $0xa0] sm:$0xff] }
  0x28   :  { %229 = vmatprep.mubr.f32.mxu0 %v842_v0  ;;  %277 = vmatprep.mubr.f32.mxu1 %v842_v0 }
  0x29   :  { %v520_v37 = vadd.f32 %v519_v35, %v985_v36 }
  0x2b   :  { %740 = vmatmul.mubr.msk.f32.gmra.mrb[10].mxu0 %vm81_vm1, %v35_v13  ;;  %748 = vmatmul.mubr.msk.f32.gmra.mrb[10].mxu1 %vm81_vm1, %v43_v14  ;;  %v521_v39 = vadd.f32 %v520_v37, %v988_v38 }
  0x2c   :  { %235 = vmatprep.mubr.f32.mxu0 %v842_v0  ;;  %283 = vmatprep.mubr.f32.mxu1 %v842_v0 }
  0x2d   :  { %v522_v41 = vadd.f32 %v521_v39, %v991_v40 }
  0x2f   :  { %741 = vmatmul.mubr.msk.f32.gmra.mrb[12].mxu0 %vm81_vm1, %v36_v15  ;;  %749 = vmatmul.mubr.msk.f32.gmra.mrb[12].mxu1 %vm81_vm1, %v44_v16  ;;  %v523_v43 = vadd.f32 %v522_v41, %v994_v42  ;;  %v1046_v41 = vld [vmem:[#allocation2 + $0xa8] sm:$0xff] }
  0x30   :  { %241 = vmatprep.mubr.f32.mxu0 %v842_v0  ;;  %289 = vmatprep.mubr.f32.mxu1 %v842_v0 }
  0x31   :  { %v524_v45 = vadd.f32 %v523_v43, %v997_v44 }
  0x33   :  { %742 = vmatmul.mubr.msk.f32.gmra.mrb[14].mxu0 %vm81_vm1, %v37_v17  ;;  %750 = vmatmul.mubr.msk.f32.gmra.mrb[14].mxu1 %vm81_vm1, %v45_v18  ;;  %v525_v47 = vadd.f32 %v524_v45, %v1000_v46 }
  0x35   :  { %v526_v49 = vadd.f32 %v525_v47, %v1003_v48 }
  0x37   :  { %v527_v51 = vadd.f32 %v526_v49, %v1006_v50 }
  0x39   :  { %v528_v53 = vadd.f32 %v527_v51, %v1009_v52 }
  0x3b   :  { %v529_v55 = vadd.f32 %v528_v53, %v1012_v54 }
  0x3d   :  { %v530_v61 = vadd.f32 %v529_v55, %v1015_v58 }
  0x3f   :  { %v531_v14 = vadd.f32 %v530_v61, %v1030_v11 }
  0x41   :  { %v532_v53 = vadd.f32 %v531_v14, %v1046_v41 }
  0xea   :  { %v201_v56 = vpop.f32.mrb[0].mxu0  ;;  %v249_v57 = vpop.f32.mrb[0].mxu1 }
  0xeb   :  { %vm296_vm2 = vcmp.le.f32.partialorder %v201_v56, 25.01  ;;  %v203_v59 = vpop.f32.mrb[1].mxu0  ;;  %vm312_vm3 = vcmp.le.f32.partialorder %v249_v57, 25.01  ;;  %v251_v60 = vpop.f32.mrb[1].mxu1 }
  0xec   :  { %v751_v62 = vsel %vm296_vm2, 1.0, %v842_v0  ;;  %vm297_vm4 = vcmp.le.f32.partialorder %v203_v59, 25.01  ;;  %v1020_v63 = vsel %vm312_vm3, 1.0, %v842_v0  ;;  %vm313_vm5 = vcmp.le.f32.partialorder %v251_v60, 25.01 }
  0xed   :  { %v392_v1 = vmul.f32 %v751_v62, %v47_v19  ;;  %v752_v2 = vsel %vm297_vm4, 1.0, %v842_v0  ;;  %v1024_v3 = vsel %vm313_vm5, 1.0, %v842_v0 }
  0xee   :  { %v393_v4 = vmul.f32 %v752_v2, %v48_v20  ;;  %v207_v5 = vpop.f32.mrb[2].mxu0  ;;  %v424_v6 = vadd.f32 %v752_v2, %v751_v62  ;;  %v255_v7 = vpop.f32.mrb[2].mxu1  ;;  %v1028_v8 = vadd.f32 %v1024_v3, %v1020_v63 }
  0xef   :  { %vm298_vm6 = vcmp.le.f32.partialorder %v207_v5, 25.01  ;;  %v209_v9 = vpop.f32.mrb[3].mxu0  ;;  %v257_v10 = vpop.f32.mrb[3].mxu1  ;;  %vm314_vm8 = vcmp.le.f32.partialorder %v255_v7, 25.01 }
  0xf0   :  { %v472_v12 = vadd.f32 %v393_v4, %v392_v1  ;;  %v753_v13 = vsel %vm298_vm6, 1.0, %v842_v0  ;;  %vm299_vm7 = vcmp.le.f32.partialorder %v209_v9, 25.01  ;;  %425 = vadd.xlane.f32.xlu0 %v424_v6  ;;  %vm315_vm9 = vcmp.le.f32.partialorder %v257_v10, 25.01  ;;  %v1062_v6 = vld [vmem:[#allocation2 + $0xb0] sm:$0xff] }
  0xf1   :  { %v394_v15 = vmul.f32 %v753_v13, %v964_v22  ;;  %v641_v16 = vadd.f32 %v753_v13, %v751_v62  ;;  %v754_v17 = vsel %vm299_vm7, 1.0, %v842_v0  ;;  %v1039_v22 = vsel %vm314_vm8, 1.0, %v842_v0 }
  0xf2   :  { %v395_v18 = vmul.f32 %v754_v17, %v967_v24  ;;  %v662_v19 = vadd.f32 %v754_v17, %v752_v2  ;;  %v213_v20 = vpop.f32.mrb[4].mxu0  ;;  %v427_v21 = vadd.f32 %v754_v17, %v753_v13  ;;  %v261_v23 = vpop.f32.mrb[4].mxu1  ;;  %v1042_v31 = vsel %vm315_vm9, 1.0, %v842_v0 }
  0xf3   :  { %v473_v25 = vadd.f32 %v472_v12, %v394_v15  ;;  %vm300_vm10 = vcmp.le.f32.partialorder %v213_v20, 25.01  ;;  %v215_v27 = vpop.f32.mrb[5].mxu0  ;;  %v263_v33 = vpop.f32.mrb[5].mxu1  ;;  %vm316_vm13 = vcmp.le.f32.partialorder %v261_v23, 25.01  ;;  %v533_v12 = vadd.f32 %v532_v53, %v1062_v6 }
  0xf4   :  { %v755_v29 = vsel %vm300_vm10, 1.0, %v842_v0  ;;  %vm301_vm11 = vcmp.le.f32.partialorder %v215_v27, 25.01  ;;  %428 = vadd.xlane.f32.xlu0 %v427_v21  ;;  %vm317_vm15 = vcmp.le.f32.partialorder %v263_v33, 25.01  ;;  %v1077_v27 = vld [vmem:[#allocation2 + $0xb8] sm:$0xff] }
  0xf5   :  { %v474_v24 = vadd.f32 %v473_v25, %v395_v18  ;;  %v396_v35 = vmul.f32 %v755_v29, %v970_v26  ;;  %v642_v37 = vadd.f32 %v755_v29, %v641_v16  ;;  %v756_v39 = vsel %vm301_vm11, 1.0, %v842_v0 }
  0xf6   :  { %v397_v43 = vmul.f32 %v756_v39, %v973_v28  ;;  %v663_v45 = vadd.f32 %v756_v39, %v662_v19  ;;  %v219_v47 = vpop.f32.mrb[6].mxu0  ;;  %v430_v49 = vadd.f32 %v756_v39, %v755_v29  ;;  %v1049_v51 = vpop.f32.mrb[6].mxu1  ;;  %v1056_v26 = vadd.f32 %v1042_v31, %v1039_v22 }
  0xf7   :  { %v475_v55 = vadd.f32 %v474_v24, %v396_v35  ;;  %vm302_vm12 = vcmp.le.f32.partialorder %v219_v47, 25.01  ;;  %v221_v56 = vpop.f32.mrb[7].mxu0  ;;  %v1052_v57 = vpop.f32.mrb[7].mxu1  ;;  %vm318_vm6 = vcmp.le.f32.partialorder %v1049_v51, 25.01 }
  0xf8   :  { %v757_v59 = vsel %vm302_vm12, 1.0, %v842_v0  ;;  %vm303_vm14 = vcmp.le.f32.partialorder %v221_v56, 25.01  ;;  %431 = vadd.xlane.f32.xlu1 %v430_v49  ;;  %vm319_vm8 = vcmp.le.f32.partialorder %v1052_v57, 25.01 }
  0xf9   :  { %v476_v28 = vadd.f32 %v475_v55, %v397_v43  ;;  %v398_v60 = vmul.f32 %v757_v59, %v976_v30  ;;  %v643_v61 = vadd.f32 %v757_v59, %v642_v37  ;;  %v758_v62 = vsel %vm303_vm14, 1.0, %v842_v0 }
  0xfa   :  { %v399_v1 = vmul.f32 %v758_v62, %v979_v32  ;;  %v664_v2 = vadd.f32 %v758_v62, %v663_v45  ;;  %v225_v4 = vpop.f32.mrb[8].mxu0  ;;  %v433_v5 = vadd.f32 %v758_v62, %v757_v59  ;;  %v273_v7 = vpop.f32.mrb[8].mxu1  ;;  %v1068_v30 = vsel %vm316_vm13, 1.0, %v842_v0 }
  0xfb   :  { %v477_v9 = vadd.f32 %v476_v28, %v398_v60  ;;  %vm304_vm0 = vcmp.le.f32.partialorder %v225_v4, 25.01  ;;  %v227_v10 = vpop.f32.mrb[9].mxu0  ;;  %v1072_v32 = vsel %vm317_vm15, 1.0, %v842_v0  ;;  %v275_v14 = vpop.f32.mrb[9].mxu1  ;;  %v408_v59 = vmul.f32 %v1020_v63, %v1006_v50 }
  0xfc   :  { %v759_v13 = vsel %vm304_vm0, 1.0, %v842_v0  ;;  %vm305_vm1 = vcmp.le.f32.partialorder %v227_v10, 25.01  ;;  %434 = vadd.xlane.f32.xlu1 %v433_v5  ;;  %vm320_vm3 = vcmp.le.f32.partialorder %v273_v7, 25.01  ;;  %v1113_v7 = vsel %vm318_vm6, 1.0, %v842_v0 }
  0xfd   :  { %v478_v15 = vadd.f32 %v477_v9, %v399_v1  ;;  %v400_v16 = vmul.f32 %v759_v13, %v982_v34  ;;  %v644_v17 = vadd.f32 %v759_v13, %v643_v61  ;;  %v760_v18 = vsel %vm305_vm1, 1.0, %v842_v0 }
  0xfe   :  { %v401_v19 = vmul.f32 %v760_v18, %v985_v36  ;;  %v665_v20 = vadd.f32 %v760_v18, %v664_v2  ;;  %v231_v21 = vpop.f32.mrb[10].mxu0  ;;  %v436_v25 = vadd.f32 %v760_v18, %v759_v13  ;;  %v1079_v23 = vpop.f32.mrb[10].mxu1  ;;  %v1085_v34 = vadd.f32 %v1072_v32, %v1068_v30 }
  0xff   :  { %v479_v29 = vadd.f32 %v478_v15, %v400_v16  ;;  %vm306_vm2 = vcmp.le.f32.partialorder %v231_v21, 25.01  ;;  %v233_v33 = vpop.f32.mrb[11].mxu0  ;;  %v1081_v24 = vpop.f32.mrb[11].mxu1  ;;  %v1089_v36 = vadd.f32 %v533_v12, %v1077_v27  ;;  %vm321_vm5 = vcmp.le.f32.partialorder %v275_v14, 25.01 }
 0x100   :  { %v761_v35 = vsel %vm306_vm2, 1.0, %v842_v0  ;;  %vm307_vm4 = vcmp.le.f32.partialorder %v233_v33, 25.01  ;;  %437 = vadd.xlane.f32.xlu0 %v436_v25  ;;  %v1105_v61 = vsel %vm321_vm5, 1.0, %v842_v0  ;;  %vm322_vm11 = vcmp.le.f32.partialorder %v1079_v23, 25.01 }
 0x101   :  { %v480_v37 = vadd.f32 %v479_v29, %v401_v19  ;;  %v402_v39 = vmul.f32 %v761_v35, %v988_v38  ;;  %v645_v43 = vadd.f32 %v761_v35, %v644_v17  ;;  %v762_v45 = vsel %vm307_vm4, 1.0, %v842_v0 }
 0x102   :  { %v403_v47 = vmul.f32 %v762_v45, %v991_v40  ;;  %v666_v49 = vadd.f32 %v762_v45, %v665_v20  ;;  %v237_v53 = vpop.f32.mrb[12].mxu0  ;;  %v439_v55 = vadd.f32 %v762_v45, %v761_v35  ;;  %v285_v56 = vpop.f32.mrb[12].mxu1  ;;  %v1101_v40 = vsel %vm320_vm3, 1.0, %v842_v0 }
 0x103   :  { %v481_v28 = vadd.f32 %v480_v37, %v402_v39  ;;  %vm308_vm7 = vcmp.le.f32.partialorder %v237_v53, 25.01  ;;  %v239_v60 = vpop.f32.mrb[13].mxu0  ;;  %v287_v62 = vpop.f32.mrb[13].mxu1  ;;  %v1122_v51 = vsel %vm319_vm8, 1.0, %v842_v0 }
 0x104   :  { %v763_v38 = vsel %vm308_vm7, 1.0, %v842_v0  ;;  %vm309_vm9 = vcmp.le.f32.partialorder %v239_v60, 25.01  ;;  %440 = vadd.xlane.f32.xlu1 %v439_v55  ;;  %vm324_vm13 = vcmp.le.f32.partialorder %v285_v56, 25.01  ;;  %v410_v60 = vmul.f32 %v1039_v22, %v1012_v54 }
 0x105   :  { %v482_v1 = vadd.f32 %v481_v28, %v403_v47  ;;  %v404_v50 = vmul.f32 %v763_v38, %v994_v42  ;;  %v646_v2 = vadd.f32 %v763_v38, %v645_v43  ;;  %v764_v4 = vsel %vm309_vm9, 1.0, %v842_v0 }
 0x106   :  { %v405_v5 = vmul.f32 %v764_v4, %v997_v44  ;;  %v667_v9 = vadd.f32 %v764_v4, %v666_v49  ;;  %v243_v10 = vpop.f32.mrb[14].mxu0  ;;  %v442_v12 = vadd.f32 %v764_v4, %v763_v38  ;;  %v291_v13 = vpop.f32.mrb[14].mxu1  ;;  %v460_v42 = vadd.f32 %v1105_v61, %v1101_v40  ;;  %v72_v4 = vld [vmem:[#allocation2 + $0xc8] sm:$0xff] }
 0x107   :  { %v483_v14 = vadd.f32 %v482_v1, %v404_v50  ;;  %vm310_vm10 = vcmp.le.f32.partialorder %v243_v10, 25.01  ;;  %v245_v15 = vpop.f32.mrb[15].mxu0  ;;  %v293_v16 = vpop.f32.mrb[15].mxu1  ;;  %vm323_vm14 = vcmp.le.f32.partialorder %v1081_v24, 25.01  ;;  %v409_v47 = vmul.f32 %v1024_v3, %v1009_v52 }
 0x108   :  { %v765_v44 = vsel %vm310_vm10, 1.0, %v842_v0  ;;  %vm311_vm12 = vcmp.le.f32.partialorder %v245_v15, 25.01  ;;  %443 = vadd.xlane.f32.xlu0 %v442_v12  ;;  %v1130_v35 = vsel %vm324_vm13, 1.0, %v842_v0  ;;  %vm325_vm15 = vcmp.le.f32.partialorder %v287_v62, 25.01 }
 0x109   :  { %v484_v17 = vadd.f32 %v483_v14, %v405_v5  ;;  %v406_v18 = vmul.f32 %v765_v44, %v1000_v46  ;;  %v647_v19 = vadd.f32 %v765_v44, %v646_v2  ;;  %v766_v20 = vsel %vm311_vm12, 1.0, %v842_v0  ;;  %v71_v52 = vld [vmem:[#allocation2 + $0xc0] sm:$0xff] }
 0x10a   :  { %v407_v21 = vmul.f32 %v766_v20, %v1003_v48  ;;  %v668_v25 = vadd.f32 %v766_v20, %v667_v9  ;;  %v445_v29 = vadd.f32 %v766_v20, %v765_v44  ;;  %v1137_v46 = vsel %vm322_vm11, 1.0, %v842_v0 }
 0x10b   :  { %v485_v33 = vadd.f32 %v484_v17, %v406_v18  ;;  %v648_v57 = vadd.f32 %v1020_v63, %v647_v19  ;;  %v1140_v48 = vsel %vm325_vm15, 1.0, %v842_v0  ;;  %v457_v63 = vadd.f32 %v1122_v51, %v1113_v7  ;;  %v74_v19 = vld [vmem:[#allocation2 + $0xd8] sm:$0xff] }
 0x10c   :  { %v669_v37 = vadd.f32 %v1024_v3, %v668_v25  ;;  %449 = vadd.xlane.f32.xlu0 %v1028_v8  ;;  %446 = vadd.xlane.f32.xlu1 %v445_v29  ;;  %v1146_v43 = vsel %vm323_vm14, 1.0, %v842_v0  ;;  %vm326_vm0 = vcmp.le.f32.partialorder %v291_v13, 25.01  ;;  %vm327_vm1 = vcmp.le.f32.partialorder %v293_v16, 25.01  ;;  %v73_v13 = vld [vmem:[#allocation2 + $0xd0] sm:$0xff] }
 0x10d   :  { %v649_v24 = vadd.f32 %v1039_v22, %v648_v57  ;;  %v486_v39 = vadd.f32 %v485_v33, %v407_v21  ;;  %v1150_v45 = vsel %vm326_vm0, 1.0, %v842_v0  ;;  %v466_v23 = vadd.f32 %v1140_v48, %v1130_v35 }
 0x10e   :  { %v670_v8 = vadd.f32 %v1042_v31, %v669_v37  ;;  %v1158_v55 = vsel %vm327_vm1, 1.0, %v842_v0  ;;  %v463_v28 = vadd.f32 %v1146_v43, %v1137_v46  ;;  %v535_v62 = vadd.f32 %v1089_v36, %v71_v52 }
 0x10f   :  { %v487_v49 = vadd.f32 %v486_v39, %v408_v59  ;;  %v650_v53 = vadd.f32 %v1068_v30, %v649_v24  ;;  %v469_v59 = vadd.f32 %v1158_v55, %v1150_v45  ;;  %v412_v54 = vmul.f32 %v1068_v30, %v1030_v11  ;;  %v75_v24 = vld [vmem:[#allocation2 + $0xe0] sm:$0xff] }
 0x110   :  { %v671_v56 = vadd.f32 %v1072_v32, %v670_v8  ;;  %455 = vadd.xlane.f32.xlu0 %v1085_v34  ;;  %452 = vadd.xlane.f32.xlu1 %v1056_v26  ;;  %v411_v26 = vmul.f32 %v1042_v31, %v1015_v58  ;;  %v536_v36 = vadd.f32 %v535_v62, %v72_v4  ;;  %v685_v57 = vlaneseq }
 0x111   :  { %v488_v38 = vadd.f32 %v487_v49, %v409_v47  ;;  %v651_v3 = vadd.f32 %v1113_v7, %v650_v53  ;;  %v413_v58 = vmul.f32 %v1072_v32, %v1046_v41  ;;  %v414_v11 = vmul.f32 %v1113_v7, %v1062_v6  ;;  %v76_v53 = vld [vmem:[#allocation2 + $0xe8] sm:$0xff] }
 0x112   :  { %v672_v1 = vadd.f32 %v1122_v51, %v671_v56  ;;  %v537_v15 = vadd.f32 %v536_v36, %v73_v13  ;;  %v415_v41 = vmul.f32 %v1122_v51, %v1077_v27  ;;  %v416_v17 = vmul.f32 %v1101_v40, %v71_v52 }
 0x113   :  { %v489_v34 = vadd.f32 %v488_v38, %v410_v60  ;;  %v652_v50 = vadd.f32 %v1101_v40, %v651_v3  ;;  %v417_v25 = vmul.f32 %v1105_v61, %v72_v4  ;;  %v843_v37 = vmov 1966171168   ;;  %v77_v3 = vld [vmem:[#allocation2 + $0xf0] sm:$0xff] }
 0x114   :  { %v673_v2 = vadd.f32 %v1105_v61, %v672_v1  ;;  %461 = vadd.xlane.f32.xlu0 %v460_v42  ;;  %458 = vadd.xlane.f32.xlu1 %v457_v63  ;;  %v538_v6 = vadd.f32 %v537_v15, %v74_v19  ;;  %v705_v63 = vunpack.c.l.s4 %v843_v37  ;;  %v418_v51 = vmul.f32 %v1137_v46, %v73_v13 }
 0x115   :  { %v490_v22 = vadd.f32 %v489_v34, %v411_v26  ;;  %v653_v5 = vadd.f32 %v1137_v46, %v652_v50  ;;  %v419_v47 = vmul.f32 %v1146_v43, %v74_v19  ;;  %v708_v61 = vshrl.u32 %v685_v57, 7 }
 0x116   :  { %v674_v9 = vadd.f32 %v1146_v43, %v673_v2  ;;  %v539_v8 = vadd.f32 %v538_v6, %v75_v24  ;;  %v420_v38 = vmul.f32 %v1130_v35, %v75_v24  ;;  %v421_v1 = vmul.f32 %v1140_v48, %v76_v53  ;;  %v78_v43 = vld [vmem:[#allocation2 + $0xf8] sm:$0xff] }
 0x117   :  { %v491_v31 = vadd.f32 %v490_v22, %v412_v54  ;;  %v654_v10 = vadd.f32 %v1130_v35, %v653_v5  ;;  %v422_v2 = vmul.f32 %v1150_v45, %v77_v3  ;;  %v423_v5 = vmul.f32 %v1158_v55, %v78_v43 }
 0x118   :  { %v675_v12 = vadd.f32 %v1140_v48, %v674_v9  ;;  %467 = vadd.xlane.f32.xlu0 %v466_v23  ;;  %464 = vadd.xlane.f32.xlu1 %v463_v28  ;;  %v706_v28 = vunpack.c.0.s8 %v705_v63  ;;  %v540_v46 = vadd.f32 %v539_v8, %v76_v53  ;;  %vm721_vm4 = vcmp.lt.s32.totalorder %v685_v57, 256 }
 0x119   :  { %v492_v30 = vadd.f32 %v491_v31, %v413_v58  ;;  %v655_v14 = vadd.f32 %v1150_v45, %v654_v10  ;;  %vm600_vm9 = vcmask 7168  }
 0x11a   :  { %v676_v42 = vadd.f32 %v1158_v55, %v675_v12  ;;  %v541_v34 = vadd.f32 %v540_v46, %v77_v3  ;;  %v709_v50 = vsub.s32 %v706_v28, %v708_v61 }
 0x11b   :  { %v493_v32 = vadd.f32 %v492_v30, %v414_v11  ;;  %v656_v16 = vrot.slane %v655_v14, 4 }
 0x11c   :  { %v677_v44 = vrot.slane %v676_v42, 4  ;;  %470 = vadd.xlane.f32.xlu1 %v469_v59  ;;  %v542_v4 = vadd.f32 %v541_v34, %v78_v43 }
 0x11d   :  { %v494_v18 = vadd.f32 %v493_v32, %v415_v41  ;;  %v657_v20 = vadd.f32 %v656_v16, %v655_v14 }
 0x11e   :  { %v678_v7 = vadd.f32 %v677_v44, %v676_v42 }
 0x11f   :  { %v495_v21 = vadd.f32 %v494_v18, %v416_v17  ;;  %v658_v29 = vrot.slane %v657_v20, 2 }
 0x120   :  { %v679_v33 = vrot.slane %v678_v7, 2  ;;  %543 = vadd.xlane.f32.xlu1 %v542_v4 }
 0x121   :  { %v496_v27 = vadd.f32 %v495_v21, %v417_v25  ;;  %v659_v39 = vadd.f32 %v658_v29, %v657_v20 }
 0x122   :  { %v680_v40 = vadd.f32 %v679_v33, %v678_v7 }
 0x123   :  { %v497_v23 = vadd.f32 %v496_v27, %v418_v51  ;;  %v660_v49 = vrot.slane %v659_v39, 1 }
 0x124   :  { %v681_v56 = vrot.slane %v680_v40, 1 }
 0x125   :  { %v498_v60 = vadd.f32 %v497_v23, %v419_v47  ;;  %v661_v52 = vadd.f32 %v660_v49, %v659_v39 }
 0x126   :  { %v682_v59 = vadd.f32 %v681_v56, %v680_v40 }
 0x127   :  { %v499_v62 = vadd.f32 %v498_v60, %v420_v38  ;;  %vm683_vm2 = vcmp.gt.f32.partialorder %v661_v52, 0.0 }
 0x128   :  { %v799_v26 = vsel %vm683_vm2, 1.0, %v842_v0  ;;  %vm684_vm3 = vcmp.gt.f32.partialorder %v682_v59, 0.0 }
 0x129   :  { %v800_v54 = vsel %vm684_vm3, 1.0, %v842_v0  ;;  %v500_v22 = vadd.f32 %v499_v62, %v421_v1 }
 0x12a   :  { %v703_v35 = vcombine.low %v799_v26, %v800_v54 }
 0x12b   :  { %v501_v36 = vadd.f32 %v500_v22, %v422_v2 }
 0x12c   :  { %v710_v9 = vrot.slane %v703_v35, %v709_v50 }
 0x12d   :  { %v502_v48 = vadd.f32 %v501_v36, %v423_v5 }
 0x12e   :  { %v717_v58 = vrot.slane %v710_v9, %v709_v50 }
 0x12f   :  { %503 = vadd.xlane.f32.xlu0 %v502_v48 }
 0x130   :  { %723 = vst.msk [vmem:[%s1245_s4] sm:$0x3] %vm721_vm4, %v717_v58 }
 0x17d   :  { %v426_v45 = vpop.xlane.xlu0 %425 }
 0x17e   :  { %vm552_vm6 = vcmp.gt.f32.partialorder %v426_v45, 0.0 }
 0x17f   :  { %v783_v11 = vsel %vm552_vm6, 1.0, %v842_v0 }
 0x180   :  { %v601_v42 = vsel %vm600_vm9, %v783_v11, 0.0 }
 0x181   :  { %v429_v31 = vpop.xlane.xlu0 %428 }
 0x182   :  { %vm553_vm5 = vcmp.gt.f32.partialorder %v429_v31, 0.0 }
 0x183   :  { %v784_v55 = vsel %vm553_vm5, 1.0, %v842_v0 }
 0x184   :  { %v602_v14 = vsel %vm600_vm9, %v784_v55, 0.0 }
 0x185   :  { %v432_v10 = vpop.xlane.xlu1 %431  ;;  %v603_v32 = vadd.f32 %v602_v14, %v601_v42 }
 0x186   :  { %vm554_vm7 = vcmp.gt.f32.partialorder %v432_v10, 0.0 }
 0x187   :  { %v785_v30 = vsel %vm554_vm7, 1.0, %v842_v0 }
 0x188   :  { %v604_v41 = vsel %vm600_vm9, %v785_v30, 0.0 }
 0x189   :  { %v435_v12 = vpop.xlane.xlu1 %434  ;;  %v605_v18 = vadd.f32 %v604_v41, %v603_v32 }
 0x18a   :  { %vm555_vm8 = vcmp.gt.f32.partialorder %v435_v12, 0.0 }
 0x18b   :  { %v786_v15 = vsel %vm555_vm8, 1.0, %v842_v0 }
 0x18c   :  { %v606_v17 = vsel %vm600_vm9, %v786_v15, 0.0 }
 0x18d   :  { %v438_v13 = vpop.xlane.xlu0 %437  ;;  %v607_v6 = vadd.f32 %v606_v17, %v605_v18 }
 0x18e   :  { %vm556_vm10 = vcmp.gt.f32.partialorder %v438_v13, 0.0 }
 0x18f   :  { %v787_v16 = vsel %vm556_vm10, 1.0, %v842_v0 }
 0x190   :  { %v608_v20 = vsel %vm600_vm9, %v787_v16, 0.0 }
 0x191   :  { %v441_v44 = vpop.xlane.xlu1 %440  ;;  %v609_v25 = vadd.f32 %v608_v20, %v607_v6 }
 0x192   :  { %vm557_vm11 = vcmp.gt.f32.partialorder %v441_v44, 0.0 }
 0x193   :  { %v788_v19 = vsel %vm557_vm11, 1.0, %v842_v0 }
 0x194   :  { %v610_v21 = vsel %vm600_vm9, %v788_v19, 0.0 }
 0x195   :  { %v444_v7 = vpop.xlane.xlu0 %443  ;;  %v611_v37 = vadd.f32 %v610_v21, %v609_v25  ;;  %v686_v21 = vand.u32 127, %v685_v57 }
 0x196   :  { %vm558_vm12 = vcmp.gt.f32.partialorder %v444_v7, 0.0 }
 0x197   :  { %v789_v29 = vsel %vm558_vm12, 1.0, %v842_v0  ;;  %vm689_vm6 = vcmp.eq.s32.totalorder %v686_v21, 2  ;;  %vm688_vm7 = vcmp.eq.s32.totalorder %v686_v21, 1  ;;  %vm687_vm8 = vcmp.eq.s32.totalorder %v686_v21, 0 }
 0x198   :  { %v612_v33 = vsel %vm600_vm9, %v789_v29, 0.0 }
 0x199   :  { %v450_v63 = vpop.xlane.xlu0 %449  ;;  %v447_v27 = vpop.xlane.xlu1 %446  ;;  %v613_v51 = vadd.f32 %v612_v33, %v611_v37 }
 0x19a   :  { %vm560_vm13 = vcmp.gt.f32.partialorder %v450_v63, 0.0  ;;  %vm559_vm14 = vcmp.gt.f32.partialorder %v447_v27, 0.0 }
 0x19b   :  { %v791_v24 = vsel %vm560_vm13, 1.0, %v842_v0  ;;  %v790_v39 = vsel %vm559_vm14, 1.0, %v842_v0 }
 0x19c   :  { %v614_v8 = vsel %vm600_vm9, %v790_v39, 0.0  ;;  %v616_v49 = vsel %vm600_vm9, %v791_v24, 0.0 }
 0x19d   :  { %v615_v40 = vadd.f32 %v614_v8, %v613_v51  ;;  %v456_v23 = vpop.xlane.xlu0 %455  ;;  %v453_v47 = vpop.xlane.xlu1 %452 }
 0x19e   :  { %vm562_vm15 = vcmp.gt.f32.partialorder %v456_v23, 0.0  ;;  %vm561_vm0 = vcmp.gt.f32.partialorder %v453_v47, 0.0 }
 0x19f   :  { %v793_v53 = vsel %vm562_vm15, 1.0, %v842_v0  ;;  %v617_v56 = vadd.f32 %v616_v49, %v615_v40  ;;  %v792_v28 = vsel %vm561_vm0, 1.0, %v842_v0 }
 0x1a0   :  { %v618_v61 = vsel %vm600_vm9, %v792_v28, 0.0  ;;  %v620_v3 = vsel %vm600_vm9, %v793_v53, 0.0 }
 0x1a1   :  { %v619_v60 = vadd.f32 %v618_v61, %v617_v56  ;;  %v462_v38 = vpop.xlane.xlu0 %461  ;;  %v459_v52 = vpop.xlane.xlu1 %458 }
 0x1a2   :  { %vm564_vm1 = vcmp.gt.f32.partialorder %v462_v38, 0.0  ;;  %vm563_vm2 = vcmp.gt.f32.partialorder %v459_v52, 0.0 }
 0x1a3   :  { %v795_v59 = vsel %vm564_vm1, 1.0, %v842_v0  ;;  %v621_v46 = vadd.f32 %v620_v3, %v619_v60  ;;  %v794_v62 = vsel %vm563_vm2, 1.0, %v842_v0 }
 0x1a4   :  { %v622_v1 = vsel %vm600_vm9, %v794_v62, 0.0  ;;  %v624_v50 = vsel %vm600_vm9, %v795_v59, 0.0 }
 0x1a5   :  { %v623_v26 = vadd.f32 %v622_v1, %v621_v46  ;;  %v468_v43 = vpop.xlane.xlu0 %467  ;;  %v465_v34 = vpop.xlane.xlu1 %464 }
 0x1a6   :  { %vm566_vm3 = vcmp.gt.f32.partialorder %v468_v43, 0.0  ;;  %vm565_vm4 = vcmp.gt.f32.partialorder %v465_v34, 0.0 }
 0x1a7   :  { %v797_v2 = vsel %vm566_vm3, 1.0, %v842_v0  ;;  %v625_v54 = vadd.f32 %v624_v50, %v623_v26  ;;  %v796_v22 = vsel %vm565_vm4, 1.0, %v842_v0 }
 0x1a8   :  { %v626_v35 = vsel %vm600_vm9, %v796_v22, 0.0  ;;  %v628_v36 = vsel %vm600_vm9, %v797_v2, 0.0 }
 0x1a9   :  { %v627_v4 = vadd.f32 %v626_v35, %v625_v54  ;;  %v471_v5 = vpop.xlane.xlu1 %470 }
 0x1aa   :  { %vm567_vm5 = vcmp.gt.f32.partialorder %v471_v5, 0.0 }
 0x1ab   :  { %v798_v9 = vsel %vm567_vm5, 1.0, %v842_v0  ;;  %v629_v48 = vadd.f32 %v628_v36, %v627_v4 }
 0x1ac   :  { %v630_v58 = vsel %vm600_vm9, %v798_v9, 0.0 }
 0x1ad   :  { %v631_v45 = vadd.f32 %v630_v58, %v629_v48  ;;  %v544_v31 = vpop.xlane.xlu1 %543 }
 0x1ae   :  { %v545_v10 = vrot.slane %v544_v31, 4 }
 0x1af   :  { %632 = vadd.xlane.f32.xlu0 %v631_v45 }
 0x1b0   :  { %v546_v55 = vadd.f32 %v545_v10, %v544_v31 }
 0x1b2   :  { %v547_v30 = vrot.slane %v546_v55, 2 }
 0x1b4   :  { %v548_v14 = vadd.f32 %v547_v30, %v546_v55 }
 0x1b6   :  { %v549_v42 = vrot.slane %v548_v14, 1 }
 0x1b8   :  { %v550_v16 = vadd.f32 %v549_v42, %v548_v14 }
 0x1bc   :  { %v504_v12 = vpop.xlane.xlu0 %503 }
 0x1bd   :  { %v505_v11 = vrot.slane %v504_v12, 4 }
 0x1bf   :  { %v506_v13 = vadd.f32 %v505_v11, %v504_v12 }
 0x1c1   :  { %v507_v15 = vrot.slane %v506_v13, 2 }
 0x1c3   :  { %v508_v41 = vadd.f32 %v507_v15, %v506_v13 }
 0x1c5   :  { %v509_v32 = vrot.slane %v508_v41, 1 }
 0x1c7   :  { %v510_v44 = vadd.f32 %v509_v32, %v508_v41 }
 0x1c9   :  { %803 = vpush %v510_v44 }
 0x1ca   :  { %805 = vpush %v550_v16 }
 0x1fa   :  { %s804_s4 = spop %803 }
 0x1fb   :  { %s806_s8 = spop %805  ;;  %v694_v37 = vstv %s804_s4 }
 0x1fc   :  { %v692_v29 = vstv %s806_s8 }
 0x23c   :  { %v633_v0 = vpop.xlane.xlu0 %632 }
 0x23d   :  { %v634_v17 = vrot.slane %v633_v0, 4 }
 0x23f   :  { %v635_v18 = vadd.f32 %v634_v17, %v633_v0 }
 0x241   :  { %v636_v19 = vrot.slane %v635_v18, 2 }
 0x243   :  { %v637_v20 = vadd.f32 %v636_v19, %v635_v18 }
 0x245   :  { %v638_v6 = vrot.slane %v637_v20, 1 }
 0x247   :  { %v639_v7 = vadd.f32 %v638_v6, %v637_v20 }
 0x249   :  { %807 = vpush %v639_v7 }
 0x27a   :  { %s808_s9 = spop %807 }
 0x27b   :  { %v690_v25 = vstv %s808_s9 }
 0x27c   :  { %v691_v33 = vsel %vm689_vm6, %v690_v25, 0.0 }
 0x27d   :  { %v693_v63 = vsel %vm688_vm7, %v692_v29, %v691_v33 }
 0x27e   :  { %v695_v27 = vsel %vm687_vm8, %v694_v37, %v693_v63 }
 0x27f   :  { %696 = vst [vmem:[%s1244_s3] sm:$0x1] %v695_v27 }
 0x280   :  { %732 = vsyncpa [#allocation3], 1 }

</bundles_post_ra>
